<compile_context>
chip_gen: v7x
topology: tpu7x:2x2x1
jax: 0.10.0
libtpu: 0.0.40
codegen_flags: <defaults>
</compile_context>

<pallas_src>
import functools

import jax
import jax.numpy as jnp
from jax.experimental import pallas as pl
from jax.experimental.pallas import tpu as pltpu

_NEG = -1e9  # softmax-neutral fill for padded class lanes


def _round_up(x, m):
    return ((x + m - 1) // m) * m


def _vmem_capacity_bytes():
    try:
        info = pltpu.get_tpu_info()
        cap = getattr(info, "vmem_capacity_bytes", None)
        if cap:
            return int(cap)
    except Exception:
        pass
    return 64 * 1024 * 1024  # conservative fallback (v7x per-core VMEM)


def _pick_tile_pairs(n_pairs, cp, itemsize, vmem_limit_bytes):
    # VMEM per pair-row:
    #   logits block : 2 pipeline buffers x (2*cp) x itemsize
    #   labels block : 2 buffers x one lane-padded int32 row (~512 B)
    #   in-kernel f32 temporaries: ~14 arrays of cp lanes
    per_row = 2 * (2 * cp * itemsize) + 2 * 512 + 14 * cp * 4
    budget = vmem_limit_bytes // 2  # headroom for pipeline + compiler scratch
    tp = budget // per_row
    tp = min(tp, _round_up(n_pairs, 8))
    tp = max(8, (tp // 8) * 8)
    return int(tp)


def _pad_classes(x, cp):
    c = x.shape[-1]
    if cp == c:
        return x
    return jnp.pad(x, ((0, 0), (0, cp - c)), constant_values=_NEG)


def _rdrop_kernel(pred_ref, lab_ref, out_ref, *, total_pairs, include_b_ce):
    i = pl.program_id(0)
    tp, two_cp = pred_ref.shape
    cp = two_cp // 2

    x = pred_ref[...].astype(jnp.float32)            # (tp, 2*cp)
    xa = x[:, :cp]                                    # pair member a (tp, cp)
    xb = x[:, cp:]                                    # pair member b (tp, cp)
    labs = lab_ref[...]                               # (tp, 2) int32
    la = labs[:, 0:1]
    lb = labs[:, 1:2]

    # stable log-softmax for both pair members
    ma = jnp.max(xa, axis=-1, keepdims=True)
    mb = jnp.max(xb, axis=-1, keepdims=True)
    ea = jnp.exp(xa - ma)
    eb = jnp.exp(xb - mb)
    sa = jnp.sum(ea, axis=-1, keepdims=True)
    sb = jnp.sum(eb, axis=-1, keepdims=True)
    lse_a = jnp.log(sa) + ma
    lse_b = jnp.log(sb) + mb
    logpa = xa - lse_a
    logpb = xb - lse_b
    pa = ea * (1.0 / sa)
    pb = eb * (1.0 / sb)

    # cross entropy: pick the label logit with a one-hot compare (no gather on TPU)
    cls = jax.lax.broadcasted_iota(jnp.int32, (tp, cp), 1)
    pick_a = jnp.sum(jnp.where(cls == la, xa, 0.0), axis=-1, keepdims=True)
    ce_rows = lse_a - pick_a                          # (tp, 1)
    if include_b_ce:
        pick_b = jnp.sum(jnp.where(cls == lb, xb, 0.0), axis=-1, keepdims=True)
        ce_rows = ce_rows + (lse_b - pick_b)

    # symmetric KL summed over classes:
    #   p2*(lp2-lp1) + p1*(lp1-lp2) == (pa - pb) * (log pa - log pb)
    kl_rows = jnp.sum((pa - pb) * (logpa - logpb), axis=-1, keepdims=True)

    # mask pairs that exist only because of row padding
    ridx = i * tp + jax.lax.broadcasted_iota(jnp.int32, (tp, 1), 0)
    valid = (ridx < total_pairs).astype(jnp.float32)
    ce_sum = jnp.sum(ce_rows * valid)
    kl_sum = jnp.sum(kl_rows * valid)

    # write the two partial sums into a lane-dense (8, 128) output slab
    sub = jax.lax.broadcasted_iota(jnp.int32, (8, 128), 0)
    lane = jax.lax.broadcasted_iota(jnp.int32, (8, 128), 1)
    tile = jnp.where((sub == 0) & (lane == 0), ce_sum,
                     jnp.where((sub == 0) & (lane == 1), kl_sum, 0.0))
    out_ref[0, :, :] = tile


def rdrop_loss(*args, alpha=4.0, rank="adjacent", tile_pairs=None):
    """Pallas TPU implementation of bert4torch RDropLoss.forward.

    Calling conventions (matching the PyTorch module):
      rdrop_loss(y_pred, y_true)            y_pred: [btz*2, C], y_true: [btz*2]
      rdrop_loss(y_pred1, y_pred2, y_true)  y_pred1/2: [btz, C], y_true: [btz]
    """
    assert len(args) in (2, 3), "RDropLoss only supports 2 or 3 input args"
    assert rank in ("adjacent", "updown")

    if len(args) == 2:
        y_pred, y_true = args
        n_rows, num_classes = y_pred.shape
        assert n_rows % 2 == 0, "2-arg mode expects an even number of rows (btz*2)"
        n_pairs = n_rows // 2
        cp = _round_up(num_classes, 128)
        pred_p = _pad_classes(y_pred, cp)
        if rank == "adjacent":
            # rows (2i, 2i+1) become one lane-concatenated row -> free reshape
            pred_ab = pred_p.reshape(n_pairs, 2 * cp)
            labels_ab = y_true.reshape(n_pairs, 2).astype(jnp.int32)
        else:  # updown
            pred_ab = jnp.concatenate([pred_p[:n_pairs], pred_p[n_pairs:]], axis=1)
            labels_ab = jnp.stack(
                [y_true[:n_pairs], y_true[n_pairs:]], axis=1).astype(jnp.int32)
        include_b_ce = True
        n_ce_rows = n_rows
    else:
        y_pred1, y_pred2, y_true = args
        n_pairs, num_classes = y_pred1.shape
        cp = _round_up(num_classes, 128)
        pred_ab = jnp.concatenate(
            [_pad_classes(y_pred1, cp), _pad_classes(y_pred2, cp)], axis=1)
        labels_ab = jnp.stack(
            [y_true.astype(jnp.int32),
             jnp.zeros_like(y_true, dtype=jnp.int32)], axis=1)
        include_b_ce = False
        n_ce_rows = n_pairs

    # VMEM-budgeted tiling (smaller on v7x's 64 MiB VMEM, larger on v5e/v6e).
    vmem_cap = _vmem_capacity_bytes()
    vmem_limit = min(int(vmem_cap * 0.75), 96 * 1024 * 1024)
    if tile_pairs is None:
        tp = _pick_tile_pairs(n_pairs, cp, pred_ab.dtype.itemsize, vmem_limit)
    else:
        tp = max(8, (int(tile_pairs) // 8) * 8)

    n_tiles = -(-n_pairs // tp)
    pairs_pad = n_tiles * tp
    if pairs_pad != n_pairs:
        pred_ab = jnp.pad(pred_ab, ((0, pairs_pad - n_pairs), (0, 0)))
        labels_ab = jnp.pad(labels_ab, ((0, pairs_pad - n_pairs), (0, 0)))

    kernel = functools.partial(
        _rdrop_kernel, total_pairs=n_pairs, include_b_ce=include_b_ce)

    partials = pl.pallas_call(
        kernel,
        out_shape=jax.ShapeDtypeStruct((n_tiles, 8, 128), jnp.float32),
        grid_spec=pltpu.PrefetchScalarGridSpec(
            num_scalar_prefetch=0,
            grid=(n_tiles,),
            in_specs=[
                pl.BlockSpec((tp, 2 * cp), lambda i: (i, 0)),
                pl.BlockSpec((tp, 2), lambda i: (i, 0)),
            ],
            out_specs=pl.BlockSpec((1, 8, 128), lambda i: (i, 0, 0)),
        ),
        compiler_params=pltpu.CompilerParams(
            dimension_semantics=("parallel",),  # independent tiles -> megacore shards
            vmem_limit_bytes=vmem_limit,
        ),
    )(pred_ab, labels_ab)

    ce_sum = jnp.sum(partials[:, 0, 0])
    kl_sum = jnp.sum(partials[:, 0, 1])
    loss_sup = ce_sum / jnp.float32(n_ce_rows)
    loss_rdrop = kl_sum / jnp.float32(n_pairs * num_classes)
    return loss_sup + loss_rdrop / 4.0 * alpha


# ----------------------------- pure-JAX reference -----------------------------

def _log_softmax(x):
    m = jnp.max(x, axis=-1, keepdims=True)
    z = x - m
    return z - jnp.log(jnp.sum(jnp.exp(z), axis=-1, keepdims=True))


def _rdrop_reference(*args, alpha=4.0, rank="adjacent"):
    if len(args) == 2:
        y_pred, y_true = args
        logp = _log_softmax(y_pred)
        ce = -jnp.mean(jnp.take_along_axis(
            logp, y_true[:, None].astype(jnp.int32), axis=-1))
        if rank == "adjacent":
            y1, y2 = y_pred[1::2], y_pred[0::2]
        else:
            h = y_true.shape[0] // 2
            y1, y2 = y_pred[:h], y_pred[h:]
    else:
        y1, y2, y_true = args
        logp = _log_softmax(y1)
        ce = -jnp.mean(jnp.take_along_axis(
            logp, y_true[:, None].astype(jnp.int32), axis=-1))
    lp1, lp2 = _log_softmax(y1), _log_softmax(y2)
    p1, p2 = jnp.exp(lp1), jnp.exp(lp2)
    kl1 = p2 * (lp2 - lp1)     # KLDivLoss(log_softmax(y1), softmax(y2)), reduction='none'
    kl2 = p1 * (lp1 - lp2)
    return ce + jnp.mean(kl1 + kl2) / 4.0 * alpha


if __name__ == "__main__":
    key = jax.random.PRNGKey(0)
    k1, k2 = jax.random.split(key)

    btz, num_labels = 8, 32                      # y_pred: [btz*2, num_labels]
    y_pred = jax.random.normal(k1, (2 * btz, num_labels), dtype=jnp.float32) * 2.0
    y_true = jax.random.randint(k2, (2 * btz,), 0, num_labels, dtype=jnp.int32)

    # 2-arg form (default rank='adjacent'), like the PyTorch module's forward
    loss = rdrop_loss(y_pred, y_true, alpha=4.0, rank="adjacent")
    loss = jax.block_until_ready(loss)
    ref = _rdrop_reference(y_pred, y_true, alpha=4.0, rank="adjacent")
    assert jnp.allclose(loss, ref, rtol=1e-4, atol=1e-4), (loss, ref)

    # 3-arg form (y_pred1, y_pred2, y_true)
    y_pred1 = y_pred[1::2]
    y_pred2 = y_pred[0::2]
    y_true_half = y_true[1::2]
    loss3 = rdrop_loss(y_pred1, y_pred2, y_true_half, alpha=4.0)
    loss3 = jax.block_until_ready(loss3)
    ref3 = _rdrop_reference(y_pred1, y_pred2, y_true_half, alpha=4.0)
    assert jnp.allclose(loss3, ref3, rtol=1e-4, atol=1e-4), (loss3, ref3)

    print("KERNEL_OK")
</pallas_src>

<mosaic_0001>
module attributes {stable_mosaic.version = 11 : i64} {
  func.func @_rdrop_kernel(%arg0: i32, %arg1: memref<8x256xf32, #tpu.memory_space<vmem>>, %arg2: memref<8x2xi32, #tpu.memory_space<vmem>>, %arg3: memref<1x8x128xf32, #tpu.memory_space<vmem>>) attributes {dimension_semantics = [#tpu.dimension_semantics<parallel>], iteration_bounds = array<i64: 1>, scalar_prefetch = 0 : i64, scratch_operands = 0 : i64, tpu.core_type = #tpu.core_type<tc>, window_params = [{transform_indices = @transform_0, window_bounds = array<i64: 8, 256>}, {transform_indices = @transform_1, window_bounds = array<i64: 8, 2>}, {transform_indices = @transform_2, window_bounds = array<i64: 1, 8, 128>}]} {
    %c0 = arith.constant 0 : index
    %c0_0 = arith.constant 0 : index
    %0 = vector.load %arg1[%c0, %c0_0] : memref<8x256xf32, #tpu.memory_space<vmem>>, vector<8x256xf32>
    %1 = vector.extract_strided_slice %0 {offsets = [0, 0], sizes = [8, 128], strides = [1, 1]} : vector<8x256xf32> to vector<8x128xf32>
    %2 = vector.extract_strided_slice %0 {offsets = [0, 128], sizes = [8, 128], strides = [1, 1]} : vector<8x256xf32> to vector<8x128xf32>
    %c0_1 = arith.constant 0 : index
    %c0_2 = arith.constant 0 : index
    %3 = vector.load %arg2[%c0_1, %c0_2] : memref<8x2xi32, #tpu.memory_space<vmem>>, vector<8x2xi32>
    %4 = vector.extract_strided_slice %3 {offsets = [0, 0], sizes = [8, 1], strides = [1, 1]} : vector<8x2xi32> to vector<8x1xi32>
    %5 = vector.extract_strided_slice %3 {offsets = [0, 1], sizes = [8, 1], strides = [1, 1]} : vector<8x2xi32> to vector<8x1xi32>
    %cst = arith.constant dense<0xFF800000> : vector<8xf32>
    %6 = vector.multi_reduction <maximumf>, %1, %cst [1] : vector<8x128xf32> to vector<8xf32>
    %7 = vector.shape_cast %6 : vector<8xf32> to vector<8x1xf32>
    %cst_3 = arith.constant dense<0xFF800000> : vector<8xf32>
    %8 = vector.multi_reduction <maximumf>, %2, %cst_3 [1] : vector<8x128xf32> to vector<8xf32>
    %9 = vector.shape_cast %8 : vector<8xf32> to vector<8x1xf32>
    %10 = vector.broadcast %7 : vector<8x1xf32> to vector<8x128xf32>
    %11 = arith.subf %1, %10 : vector<8x128xf32>
    %12 = math.exp %11 : vector<8x128xf32>
    %13 = vector.broadcast %9 : vector<8x1xf32> to vector<8x128xf32>
    %14 = arith.subf %2, %13 : vector<8x128xf32>
    %15 = math.exp %14 : vector<8x128xf32>
    %cst_4 = arith.constant dense<0.000000e+00> : vector<8xf32>
    %16 = vector.multi_reduction <add>, %12, %cst_4 [1] : vector<8x128xf32> to vector<8xf32>
    %17 = vector.shape_cast %16 : vector<8xf32> to vector<8x1xf32>
    %cst_5 = arith.constant dense<0.000000e+00> : vector<8xf32>
    %18 = vector.multi_reduction <add>, %15, %cst_5 [1] : vector<8x128xf32> to vector<8xf32>
    %19 = vector.shape_cast %18 : vector<8xf32> to vector<8x1xf32>
    %20 = math.log %17 : vector<8x1xf32>
    %21 = arith.addf %20, %7 : vector<8x1xf32>
    %22 = math.log %19 : vector<8x1xf32>
    %23 = arith.addf %22, %9 : vector<8x1xf32>
    %24 = vector.broadcast %21 : vector<8x1xf32> to vector<8x128xf32>
    %25 = arith.subf %1, %24 : vector<8x128xf32>
    %26 = vector.broadcast %23 : vector<8x1xf32> to vector<8x128xf32>
    %27 = arith.subf %2, %26 : vector<8x128xf32>
    %cst_6 = arith.constant 1.000000e+00 : f32
    %28 = vector.broadcast %cst_6 : f32 to vector<8x1xf32>
    %29 = arith.divf %28, %17 : vector<8x1xf32>
    %30 = vector.broadcast %29 : vector<8x1xf32> to vector<8x128xf32>
    %31 = arith.mulf %12, %30 : vector<8x128xf32>
    %cst_7 = arith.constant 1.000000e+00 : f32
    %32 = vector.broadcast %cst_7 : f32 to vector<8x1xf32>
    %33 = arith.divf %32, %19 : vector<8x1xf32>
    %34 = vector.broadcast %33 : vector<8x1xf32> to vector<8x128xf32>
    %35 = arith.mulf %15, %34 : vector<8x128xf32>
    %36 = tpu.iota {dimensions = array<i32: 1>} : vector<8x128xi32>
    %37 = vector.broadcast %4 : vector<8x1xi32> to vector<8x128xi32>
    %38 = arith.cmpi eq, %36, %37 : vector<8x128xi32>
    %cst_8 = arith.constant 0.000000e+00 : f32
    %39 = vector.broadcast %cst_8 : f32 to vector<8x128xf32>
    %40 = arith.select %38, %1, %39 : vector<8x128xi1>, vector<8x128xf32>
    %cst_9 = arith.constant dense<0.000000e+00> : vector<8xf32>
    %41 = vector.multi_reduction <add>, %40, %cst_9 [1] : vector<8x128xf32> to vector<8xf32>
    %42 = vector.shape_cast %41 : vector<8xf32> to vector<8x1xf32>
    %43 = arith.subf %21, %42 : vector<8x1xf32>
    %44 = vector.broadcast %5 : vector<8x1xi32> to vector<8x128xi32>
    %45 = arith.cmpi eq, %36, %44 : vector<8x128xi32>
    %cst_10 = arith.constant 0.000000e+00 : f32
    %46 = vector.broadcast %cst_10 : f32 to vector<8x128xf32>
    %47 = arith.select %45, %2, %46 : vector<8x128xi1>, vector<8x128xf32>
    %cst_11 = arith.constant dense<0.000000e+00> : vector<8xf32>
    %48 = vector.multi_reduction <add>, %47, %cst_11 [1] : vector<8x128xf32> to vector<8xf32>
    %49 = vector.shape_cast %48 : vector<8xf32> to vector<8x1xf32>
    %50 = arith.subf %23, %49 : vector<8x1xf32>
    %51 = arith.addf %43, %50 : vector<8x1xf32>
    %52 = arith.subf %31, %35 : vector<8x128xf32>
    %53 = arith.subf %25, %27 : vector<8x128xf32>
    %54 = arith.mulf %52, %53 : vector<8x128xf32>
    %cst_12 = arith.constant dense<0.000000e+00> : vector<8xf32>
    %55 = vector.multi_reduction <add>, %54, %cst_12 [1] : vector<8x128xf32> to vector<8xf32>
    %56 = vector.shape_cast %55 : vector<8xf32> to vector<8x1xf32>
    %c8_i32 = arith.constant 8 : i32
    %57 = arith.muli %arg0, %c8_i32 : i32
    %58 = tpu.iota {dimensions = array<i32: 0>} : vector<8x1xi32>
    %59 = vector.broadcast %57 : i32 to vector<8x1xi32>
    %60 = arith.addi %59, %58 : vector<8x1xi32>
    %c8_i32_13 = arith.constant 8 : i32
    %61 = vector.broadcast %c8_i32_13 : i32 to vector<8x1xi32>
    %62 = arith.cmpi slt, %60, %61 : vector<8x1xi32>
    %63 = arith.extui %62 : vector<8x1xi1> to vector<8x1xi32>
    %64 = arith.sitofp %63 : vector<8x1xi32> to vector<8x1xf32>
    %65 = arith.mulf %51, %64 : vector<8x1xf32>
    %66 = vector.shape_cast %65 : vector<8x1xf32> to vector<1x8x1xf32>
    %cst_14 = arith.constant dense<0.000000e+00> : vector<1xf32>
    %67 = vector.multi_reduction <add>, %66, %cst_14 [1, 2] : vector<1x8x1xf32> to vector<1xf32>
    %68 = vector.shape_cast %67 : vector<1xf32> to vector<1x1x1xf32>
    %69 = vector.extract %68[0, 0, 0] : f32 from vector<1x1x1xf32>
    %70 = arith.mulf %56, %64 : vector<8x1xf32>
    %71 = vector.shape_cast %70 : vector<8x1xf32> to vector<1x8x1xf32>
    %cst_15 = arith.constant dense<0.000000e+00> : vector<1xf32>
    %72 = vector.multi_reduction <add>, %71, %cst_15 [1, 2] : vector<1x8x1xf32> to vector<1xf32>
    %73 = vector.shape_cast %72 : vector<1xf32> to vector<1x1x1xf32>
    %74 = vector.extract %73[0, 0, 0] : f32 from vector<1x1x1xf32>
    %75 = tpu.iota {dimensions = array<i32: 0>} : vector<8x128xi32>
    %76 = tpu.iota {dimensions = array<i32: 1>} : vector<8x128xi32>
    %c0_i32 = arith.constant 0 : i32
    %77 = vector.broadcast %c0_i32 : i32 to vector<8x128xi32>
    %78 = arith.cmpi eq, %75, %77 : vector<8x128xi32>
    %c0_i32_16 = arith.constant 0 : i32
    %79 = vector.broadcast %c0_i32_16 : i32 to vector<8x128xi32>
    %80 = arith.cmpi eq, %76, %79 : vector<8x128xi32>
    %81 = arith.andi %78, %80 : vector<8x128xi1>
    %c0_i32_17 = arith.constant 0 : i32
    %82 = vector.broadcast %c0_i32_17 : i32 to vector<8x128xi32>
    %83 = arith.cmpi eq, %75, %82 : vector<8x128xi32>
    %c1_i32 = arith.constant 1 : i32
    %84 = vector.broadcast %c1_i32 : i32 to vector<8x128xi32>
    %85 = arith.cmpi eq, %76, %84 : vector<8x128xi32>
    %86 = arith.andi %83, %85 : vector<8x128xi1>
    %cst_18 = arith.constant 0.000000e+00 : f32
    %87 = vector.broadcast %74 : f32 to vector<8x128xf32>
    %88 = vector.broadcast %cst_18 : f32 to vector<8x128xf32>
    %89 = arith.select %86, %87, %88 : vector<8x128xi1>, vector<8x128xf32>
    %90 = vector.broadcast %69 : f32 to vector<8x128xf32>
    %91 = arith.select %81, %90, %89 : vector<8x128xi1>, vector<8x128xf32>
    %c0_19 = arith.constant 0 : index
    %c0_20 = arith.constant 0 : index
    %c0_21 = arith.constant 0 : index
    %92 = vector.load %arg3[%c0_19, %c0_20, %c0_21] : memref<1x8x128xf32, #tpu.memory_space<vmem>>, vector<1x8x128xf32>
    %93 = vector.shape_cast %92 : vector<1x8x128xf32> to vector<8x128xf32>
    %94 = vector.shape_cast %91 : vector<8x128xf32> to vector<1x8x128xf32>
    tpu.vector_store %arg3[%c0_19, %c0_20, %c0_21], %94 {strides = array<i32>} : memref<1x8x128xf32, #tpu.memory_space<vmem>>, vector<1x8x128xf32>,
    return
  }
  func.func @transform_0(%arg0: i32) -> (i32, i32) {
    %c0_i32 = arith.constant 0 : i32
    %c0_i32_0 = arith.constant 0 : i32
    return %arg0, %c0_i32 : i32, i32
  }
  func.func @transform_1(%arg0: i32) -> (i32, i32) {
    %c0_i32 = arith.constant 0 : i32
    %c0_i32_0 = arith.constant 0 : i32
    return %arg0, %c0_i32 : i32, i32
  }
  func.func @transform_2(%arg0: i32) -> (i32, i32, i32) {
    %c0_i32 = arith.constant 0 : i32
    %c0_i32_0 = arith.constant 0 : i32
    %c0_i32_1 = arith.constant 0 : i32
    return %arg0, %c0_i32, %c0_i32_0 : i32, i32, i32
  }
}

</mosaic_0001>

<bundles_post_ra>
// kernel: tpu_custom_call.1
= control target key start
LH: loop header
LB: loop body
LE: loop exit
PB: predicated region body
PF: predicated region fallthrough
CT: control target
= control target key end

     0   :  { %7 = vsyncpa [#allocation3], 0  ;;  %s258_s0 = inlined_call_operand.hbm [shape: f32[8,256], index: 0, kind: input, shape index: {}]   ;;  %s259_s1 = inlined_call_operand.vmem [shape: s32[8,2], index: 1, kind: input, shape index: {}]   ;;  %s260_s2 = inlined_call_operand.hbm [shape: f32[1,8,128], index: 2, kind: output, shape index: {}]  }
   0x1   :  { %8 = vsyncpa [#allocation4], 0  ;;  %s206_s9 = smov [#allocation2]   ;;  %s158_s13 = scalar_lea.hbm %s258_s0, 256 }
   0x2   :  { %s15_s10 = sshll.u32 %s206_s9, 4  ;;  %p159_p0 = scmp.ne.s32.totalorder %s258_s0, %s158_s13  ;;  %s16_s10 = int_to_ptr.vmem [resolvable:$true] %s15_s10 }
   0x3   :  { %p162_p1 = scmp.lt.u32.totalorder %s158_s13, %s258_s0 }
   0x5   :  { %p164_p2 = pnand %p162_p1, %p159_p0 }
   0x7   :  { %167 = shalt.err (!%p164_p2)
}
   0x8   :  { %s168_s18 = scalar_lea.vmem %s16_s10, 256  ;;  %p173_p4 = scmp.lt.s32.totalorder %s16_s10, %s16_s10 }
   0x9   :  { %p169_p3 = scmp.ne.s32.totalorder %s16_s10, %s168_s18  ;;  %p174_p5 = scmp.lt.s32.totalorder %s168_s18, %s168_s18 }
   0xb   :  { %p175_p6 = por %p174_p5, %p173_p4 }
   0xd   :  { %p176_p7 = pnand %p175_p6, %p169_p3 }
   0xf   :  { %179 = shalt.err (!%p176_p7)
}
  0x10   :  { %18 = dma.hbm_to_vmem [thread:$0]  %s258_s0, 256, %s16_s10, [#allocation3]  }
  0x11   :  { %202 = dma.done.wait [#allocation3], 256  }
  0x12   :  { %203 = vsyncadd [#allocation3], 4294967040  ;;  %v207_v0 = vmov 0   ;;  %v24_v1 = vld [vmem:[#allocation2] sm:$0xff]  ;;  %v25_v2 = vld [vmem:[#allocation2 + $0x8] sm:$0xff]  ;;  %v208_v4 = vmov 1   ;;  %v55_v13 = vlaneseq }
  0x13   :  { %143 = vset.pattern.permute.xlu0 %v207_v0  ;;  %v26_v3 = vld [vmem:[%s259_s1] sm:$0xff]  ;;  %144 = vset.pattern.permute.xlu1 %v208_v4  ;;  %vm88_vm2 = vcmask 7168   ;;  %s209_s1 = smov [#allocation5]  }
  0x14   :  { %27 = vmax.xlane.f32.xlu0 %v24_v1  ;;  %v240_v14 = vand.u32 127, %v55_v13  ;;  %v81_v58 = vshrl.u32 %v55_v13, 7  ;;  %s126_s23 = sshll.u32 %s209_s1, 4  ;;  %s127_s23 = int_to_ptr.vmem [resolvable:$true] %s126_s23 }
  0x15   :  { %s180_s25 = scalar_lea.vmem %s127_s23, 128  ;;  %p185_p9 = scmp.lt.s32.totalorder %s127_s23, %s127_s23 }
  0x16   :  { %vm110_vm3 = vcmp.eq.s32.totalorder %v81_v58, 0  ;;  %vm113_vm4 = vcmp.eq.s32.totalorder %v240_v14, 1  ;;  %vm111_vm5 = vcmp.eq.s32.totalorder %v240_v14, 0  ;;  %p181_p8 = scmp.ne.s32.totalorder %s127_s23, %s180_s25  ;;  %p186_p10 = scmp.lt.s32.totalorder %s180_s25, %s180_s25 }
  0x17   :  { %vm114_vm6 = vmand %vm110_vm3, %vm113_vm4 }
  0x18   :  { %29 = vmax.xlane.f32.xlu0 %v25_v2  ;;  %vm112_vm7 = vmand %vm110_vm3, %vm111_vm5  ;;  %p187_p11 = por %p186_p10, %p185_p9 }
  0x1a   :  { %p188_p12 = pnand %p187_p11, %p181_p8 }
  0x2e   :  { %58 = vperm.xlu0 %143, %v26_v3  }
  0x32   :  { %145 = vset.pattern.permute.xlu0 %v208_v4 }
  0xa1   :  { %v28_v5 = vpop.xlane.xlu0 %27 }
  0xa2   :  { %v31_v6 = vsub.f32 %v24_v1, %v28_v5 }
  0xa4   :  { %v32_v7 = vmul.f32 1.442695, %v31_v6 }
  0xa5   :  { %v30_v8 = vpop.xlane.xlu0 %29 }
  0xa6   :  { %146 = vpow2.f32 %v32_v7  ;;  %v34_v9 = vsub.f32 %v25_v2, %v30_v8 }
  0xa8   :  { %v35_v10 = vmul.f32 1.442695, %v34_v9 }
  0xaa   :  { %148 = vpow2.f32 %v35_v10 }
  0xad   :  { %v59_v15 = vpop.permute.xlu0 %58 }
  0xae   :  { %vm60_vm0 = vcmp.eq.s32.totalorder %v240_v14, %v59_v15 }
  0xaf   :  { %v61_v16 = vsel %vm60_vm0, %v24_v1, 0.0 }
  0xb0   :  { %v147_v11 = vpop.eup %146 }
  0xb1   :  { %37 = vadd.xlane.f32.xlu1 %v147_v11 }
  0xb4   :  { %v149_v12 = vpop.eup %148 }
  0xb5   :  { %39 = vadd.xlane.f32.xlu1 %v149_v12 }
  0xc6   :  { %66 = vperm.xlu1 %144, %v26_v3  }
  0xea   :  { %62 = vadd.xlane.f32.xlu1 %v61_v16 }
 0x13e   :  { %v38_v17 = vpop.xlane.xlu1 %37 }
 0x13f   :  { %150 = vlog2.f32 %v38_v17 }
 0x142   :  { %v40_v18 = vpop.xlane.xlu1 %39 }
 0x143   :  { %152 = vlog2.f32 %v40_v18 }
 0x144   :  { %154 = vrcp.f32 %v40_v18 }
 0x145   :  { %156 = vrcp.f32 %v38_v17 }
 0x146   :  { %v67_v19 = vpop.permute.xlu1 %66 }
 0x147   :  { %vm68_vm1 = vcmp.eq.s32.totalorder %v240_v14, %v67_v19 }
 0x148   :  { %v69_v20 = vsel %vm68_vm1, %v25_v2, 0.0 }
 0x149   :  { %v151_v21 = vpop.eup %150  ;;  %70 = vadd.xlane.f32.xlu0 %v69_v20 }
 0x14a   :  { %v42_v22 = vmul.f32 0.6931472, %v151_v21 }
 0x14c   :  { %v43_v25 = vadd.f32 %v42_v22, %v28_v5 }
 0x14d   :  { %v153_v23 = vpop.eup %152 }
 0x14e   :  { %v155_v24 = vpop.eup %154  ;;  %v45_v26 = vmul.f32 0.6931472, %v153_v23  ;;  %v47_v30 = vsub.f32 %v24_v1, %v43_v25 }
 0x14f   :  { %v157_v27 = vpop.eup %156  ;;  %v54_v29 = vmul.f32 %v155_v24, %v149_v12 }
 0x150   :  { %v46_v28 = vadd.f32 %v45_v26, %v30_v8  ;;  %v51_v32 = vmul.f32 %v157_v27, %v147_v11 }
 0x152   :  { %v48_v31 = vsub.f32 %v25_v2, %v46_v28  ;;  %v74_v33 = vsub.f32 %v51_v32, %v54_v29 }
 0x154   :  { %v75_v34 = vsub.f32 %v47_v30, %v48_v31 }
 0x156   :  { %v76_v35 = vmul.f32 %v75_v34, %v74_v33 }
 0x158   :  { %77 = vadd.xlane.f32.xlu1 %v76_v35 }
 0x177   :  { %v63_v36 = vpop.xlane.xlu1 %62 }
 0x178   :  { %v64_v38 = vsub.f32 %v43_v25, %v63_v36 }
 0x1d6   :  { %v71_v37 = vpop.xlane.xlu0 %70 }
 0x1d7   :  { %v72_v39 = vsub.f32 %v46_v28, %v71_v37 }
 0x1d9   :  { %v73_v40 = vadd.f32 %v72_v39, %v64_v38 }
 0x1db   :  { %v89_v41 = vsel %vm88_vm2, %v73_v40, 0.0 }
 0x1dc   :  { %90 = vadd.xlane.f32.xlu1 %v89_v41 }
 0x1e5   :  { %v78_v42 = vpop.xlane.xlu1 %77 }
 0x1e6   :  { %v100_v43 = vsel %vm88_vm2, %v78_v42, 0.0 }
 0x1e7   :  { %101 = vadd.xlane.f32.xlu1 %v100_v43 }
 0x269   :  { %v91_v44 = vpop.xlane.xlu1 %90 }
 0x26a   :  { %v92_v45 = vrot.slane %v91_v44, 4 }
 0x26c   :  { %v93_v46 = vadd.f32 %v92_v45, %v91_v44 }
 0x26e   :  { %v94_v47 = vrot.slane %v93_v46, 2 }
 0x270   :  { %v95_v48 = vadd.f32 %v94_v47, %v93_v46 }
 0x272   :  { %v96_v49 = vrot.slane %v95_v48, 1 }
 0x274   :  { %v102_v50 = vpop.xlane.xlu1 %101  ;;  %v97_v51 = vadd.f32 %v96_v49, %v95_v48 }
 0x275   :  { %v103_v52 = vrot.slane %v102_v50, 4 }
 0x276   :  { %135 = vpush %v97_v51 }
 0x277   :  { %v104_v53 = vadd.f32 %v103_v52, %v102_v50 }
 0x279   :  { %v105_v54 = vrot.slane %v104_v53, 2 }
 0x27b   :  { %v106_v55 = vadd.f32 %v105_v54, %v104_v53 }
 0x27d   :  { %v107_v56 = vrot.slane %v106_v55, 1 }
 0x27f   :  { %v108_v57 = vadd.f32 %v107_v56, %v106_v55 }
 0x281   :  { %137 = vpush %v108_v57 }
 0x2a7   :  { %s136_s0 = spop %135 }
 0x2a8   :  { %v117_v60 = vstv %s136_s0 }
 0x2b2   :  { %s138_s24 = spop %137 }
 0x2b3   :  { %v115_v59 = vstv %s138_s24 }
 0x2b4   :  { %v116_v61 = vsel %vm114_vm6, %v115_v59, 0.0 }
 0x2b5   :  { %v118_v62 = vsel %vm112_vm7, %v117_v60, %v116_v61 }
 0x2b6   :  { %119 = vst [vmem:[#allocation5] sm:$0xff] %v118_v62 }
 0x2b7   :  { %191 = shalt.err (!%p188_p12)
}
 0x2b8   :  { %s192_s28 = scalar_lea.hbm %s260_s2, 128 }
 0x2b9   :  { %p193_p13 = scmp.ne.s32.totalorder %s260_s2, %s192_s28  ;;  %p196_p0 = scmp.lt.u32.totalorder %s192_s28, %s260_s2 }
 0x2bb   :  { %p198_p1 = pnand %p196_p0, %p193_p13 }
 0x2bd   :  { %201 = shalt.err (!%p198_p1)
}
 0x2be   :  { %129 = dma.vmem_to_hbm [thread:$0]  %s127_s23, 128, %s260_s2, [#allocation4]  }
 0x2bf   :  { %204 = dma.done.wait [#allocation4], 128  }
 0x2c0   :  { %205 = vsyncadd [#allocation4], 4294967168 }
 0x2c1   :  { %133 = vsyncpa [#allocation3], 1 }
 0x2c2   :  { %134 = vsyncpa [#allocation4], 1 }

</bundles_post_ra>
